<compile_context>
chip_gen: v6e
topology: v6e:2x2x1
jax: 0.10.0
libtpu: 0.0.40
codegen_flags: <defaults>
</compile_context>

<pallas_src>
import jax
import jax.numpy as jnp
from jax.experimental import pallas as pl
from jax.experimental.pallas import tpu as pltpu

INPUT_DIM = 10
NUM_EXPERTS = 4
OUTPUT_DIM = 5


def moe_fused_kernel(x_ref, w_ref, b_ref, out_ref, probs_ref):
    # x_ref:     (B, D)            input activations
    # w_ref:     (D, E + E*O)      [ gate W | expert0 W | ... | expert(E-1) W ]  (transposed)
    # b_ref:     (1, E + E*O)      [ gate b | expert0 b | ... | expert(E-1) b ]
    # out_ref:   (B, O)            MoE output
    # probs_ref: (B, E)            gate probabilities
    E, O = NUM_EXPERTS, OUTPUT_DIM
    x = x_ref[...]  # (B, D) f32

    # ---- single fused MXU matmul (gate + all experts) + one bias add ----
    y = jnp.dot(x, w_ref[...], preferred_element_type=jnp.float32) + b_ref[...]

    logits = y[:, :E]   # (B, E)   gate logits
    eo = y[:, E:]       # (B, E*O) expert outputs, expert n in lanes [n*O:(n+1)*O]

    # ---- softmax over experts (exact division; probs sum to 1) ----
    m = jnp.max(logits, axis=-1, keepdims=True)
    ez = jnp.exp(logits - m)
    probs = ez / jnp.sum(ez, axis=-1, keepdims=True)   # (B, E)

    # ---- gate-weighted combine == einsum('bne,bn->be') via static lane slices ----
    acc = jnp.zeros((x.shape[0], O), jnp.float32)
    for n in range(E):  # static unrolled, E = 4 — no reshape (would force relayout)
        acc = acc + probs[:, n:n + 1] * eo[:, n * O:(n + 1) * O]

    # ---- two direct stores, no concat/slice ----
    out_ref[...] = acc
    probs_ref[...] = probs


def pack_moe_params(wg, bg, we, be):
    """Pack gate + expert weights/biases into one matmul operand.

    Call ONCE at parameter-init time (not in the per-step hot path).
      wg: (D, E)  bg: (1, E)  we: (E, D, O)  be: (E, 1, O)
    Returns w_packed: (D, E + E*O), b_packed: (1, E + E*O).
    """
    D, E = wg.shape
    O = we.shape[2]
    we_flat = jnp.transpose(we, (1, 0, 2)).reshape(D, E * O)   # expert n -> cols [n*O:(n+1)*O]
    be_flat = be.reshape(1, E * O)
    w_packed = jnp.concatenate([wg, we_flat], axis=1)          # (D, E + E*O)
    b_packed = jnp.concatenate([bg, be_flat], axis=1)          # (1, E + E*O)
    return w_packed, b_packed


@jax.jit
def moe_forward(x, w_packed, b_packed):
    """x: (B, D); w_packed: (D, E + E*O); b_packed: (1, E + E*O)."""
    B = x.shape[0]
    vmem = pl.BlockSpec(memory_space=pltpu.MemorySpace.VMEM)
    out, probs = pl.pallas_call(
        moe_fused_kernel,
        out_shape=(
            jax.ShapeDtypeStruct((B, OUTPUT_DIM), jnp.float32),
            jax.ShapeDtypeStruct((B, NUM_EXPERTS), jnp.float32),
        ),
        in_specs=[vmem, vmem, vmem],
        out_specs=(vmem, vmem),
    )(x, w_packed, b_packed)
    return out, probs


def moe_reference(x, wg, bg, we, be):
    logits = x @ wg + bg
    probs = jax.nn.softmax(logits, axis=-1)
    expert_outputs = jnp.einsum("bd,edo->beo", x, we) + be[:, 0, :][None]  # (B, E, O)
    out = jnp.einsum("bne,bn->be", expert_outputs, probs)
    return out, probs


if __name__ == "__main__":
    B = 8
    key = jax.random.PRNGKey(0)
    kx, kwg, kbg, kwe, kbe = jax.random.split(key, 5)

    x = jax.random.normal(kx, (B, INPUT_DIM), dtype=jnp.float32)
    # Parameters stored transposed so the kernel computes x @ W + b == torch Linear.
    wg = 0.1 * jax.random.normal(kwg, (INPUT_DIM, NUM_EXPERTS), dtype=jnp.float32)
    bg = 0.1 * jax.random.normal(kbg, (1, NUM_EXPERTS), dtype=jnp.float32)
    we = 0.1 * jax.random.normal(kwe, (NUM_EXPERTS, INPUT_DIM, OUTPUT_DIM), dtype=jnp.float32)
    be = 0.1 * jax.random.normal(kbe, (NUM_EXPERTS, 1, OUTPUT_DIM), dtype=jnp.float32)

    # Pack once (init time), not per forward call.
    w_packed, b_packed = pack_moe_params(wg, bg, we, be)
    w_packed, b_packed = jax.block_until_ready((w_packed, b_packed))

    out, probs = moe_forward(x, w_packed, b_packed)
    jax.block_until_ready((out, probs))

    ref_out, ref_probs = moe_reference(x, wg, bg, we, be)
    assert jnp.allclose(out, ref_out, atol=1e-5, rtol=1e-5), "MoE output mismatch"
    assert jnp.allclose(probs, ref_probs, atol=1e-5, rtol=1e-5), "gate probs mismatch"
    assert jnp.allclose(jnp.sum(probs, axis=-1), 1.0, atol=1e-5), "probs not normalized"

    print("KERNEL_OK")
</pallas_src>

<mosaic_0001>
module attributes {stable_mosaic.version = 11 : i64} {
  func.func @moe_fused_kernel(%arg0: memref<8x10xf32, #tpu.memory_space<vmem>>, %arg1: memref<10x24xf32, #tpu.memory_space<vmem>>, %arg2: memref<1x24xf32, #tpu.memory_space<vmem>>, %arg3: memref<8x5xf32, #tpu.memory_space<vmem>>, %arg4: memref<8x4xf32, #tpu.memory_space<vmem>>) attributes {dimension_semantics = [], scalar_prefetch = 0 : i64, scratch_operands = 0 : i64, tpu.core_type = #tpu.core_type<tc>} {
    %c0 = arith.constant 0 : index
    %c0_0 = arith.constant 0 : index
    %0 = vector.load %arg0[%c0, %c0_0] : memref<8x10xf32, #tpu.memory_space<vmem>>, vector<8x10xf32>
    %c0_1 = arith.constant 0 : index
    %c0_2 = arith.constant 0 : index
    %1 = vector.load %arg1[%c0_1, %c0_2] : memref<10x24xf32, #tpu.memory_space<vmem>>, vector<10x24xf32>
    %cst = arith.constant dense<0.000000e+00> : vector<8x24xf32>
    %2 = tpu.matmul %0, %1, %cst {dimension_numbers = #tpu.dot_dimension_numbers<[1], [0], [0], [1], [0, 0, 1, 1], [], []>} : vector<8x10xf32>, vector<10x24xf32>, vector<8x24xf32> -> vector<8x24xf32>
    %c0_3 = arith.constant 0 : index
    %c0_4 = arith.constant 0 : index
    %3 = vector.load %arg2[%c0_3, %c0_4] : memref<1x24xf32, #tpu.memory_space<vmem>>, vector<1x24xf32>
    %4 = vector.broadcast %3 : vector<1x24xf32> to vector<8x24xf32>
    %5 = arith.addf %2, %4 : vector<8x24xf32>
    %6 = vector.extract_strided_slice %5 {offsets = [0, 0], sizes = [8, 4], strides = [1, 1]} : vector<8x24xf32> to vector<8x4xf32>
    %7 = vector.extract_strided_slice %5 {offsets = [0, 4], sizes = [8, 20], strides = [1, 1]} : vector<8x24xf32> to vector<8x20xf32>
    %cst_5 = arith.constant dense<0xFF800000> : vector<8xf32>
    %8 = vector.multi_reduction <maximumf>, %6, %cst_5 [1] : vector<8x4xf32> to vector<8xf32>
    %9 = vector.shape_cast %8 : vector<8xf32> to vector<8x1xf32>
    %10 = vector.broadcast %9 : vector<8x1xf32> to vector<8x4xf32>
    %11 = arith.subf %6, %10 : vector<8x4xf32>
    %12 = math.exp %11 : vector<8x4xf32>
    %cst_6 = arith.constant dense<0.000000e+00> : vector<8xf32>
    %13 = vector.multi_reduction <add>, %12, %cst_6 [1] : vector<8x4xf32> to vector<8xf32>
    %14 = vector.shape_cast %13 : vector<8xf32> to vector<8x1xf32>
    %15 = vector.broadcast %14 : vector<8x1xf32> to vector<8x4xf32>
    %16 = arith.divf %12, %15 : vector<8x4xf32>
    %cst_7 = arith.constant 0.000000e+00 : f32
    %17 = vector.broadcast %cst_7 : f32 to vector<8x5xf32>
    %18 = vector.extract_strided_slice %16 {offsets = [0, 0], sizes = [8, 1], strides = [1, 1]} : vector<8x4xf32> to vector<8x1xf32>
    %19 = vector.extract_strided_slice %7 {offsets = [0, 0], sizes = [8, 5], strides = [1, 1]} : vector<8x20xf32> to vector<8x5xf32>
    %20 = vector.broadcast %18 : vector<8x1xf32> to vector<8x5xf32>
    %21 = arith.mulf %20, %19 : vector<8x5xf32>
    %22 = arith.addf %17, %21 : vector<8x5xf32>
    %23 = vector.extract_strided_slice %16 {offsets = [0, 1], sizes = [8, 1], strides = [1, 1]} : vector<8x4xf32> to vector<8x1xf32>
    %24 = vector.extract_strided_slice %7 {offsets = [0, 5], sizes = [8, 5], strides = [1, 1]} : vector<8x20xf32> to vector<8x5xf32>
    %25 = vector.broadcast %23 : vector<8x1xf32> to vector<8x5xf32>
    %26 = arith.mulf %25, %24 : vector<8x5xf32>
    %27 = arith.addf %22, %26 : vector<8x5xf32>
    %28 = vector.extract_strided_slice %16 {offsets = [0, 2], sizes = [8, 1], strides = [1, 1]} : vector<8x4xf32> to vector<8x1xf32>
    %29 = vector.extract_strided_slice %7 {offsets = [0, 10], sizes = [8, 5], strides = [1, 1]} : vector<8x20xf32> to vector<8x5xf32>
    %30 = vector.broadcast %28 : vector<8x1xf32> to vector<8x5xf32>
    %31 = arith.mulf %30, %29 : vector<8x5xf32>
    %32 = arith.addf %27, %31 : vector<8x5xf32>
    %33 = vector.extract_strided_slice %16 {offsets = [0, 3], sizes = [8, 1], strides = [1, 1]} : vector<8x4xf32> to vector<8x1xf32>
    %34 = vector.extract_strided_slice %7 {offsets = [0, 15], sizes = [8, 5], strides = [1, 1]} : vector<8x20xf32> to vector<8x5xf32>
    %35 = vector.broadcast %33 : vector<8x1xf32> to vector<8x5xf32>
    %36 = arith.mulf %35, %34 : vector<8x5xf32>
    %37 = arith.addf %32, %36 : vector<8x5xf32>
    %c0_8 = arith.constant 0 : index
    %c0_9 = arith.constant 0 : index
    %38 = vector.load %arg3[%c0_8, %c0_9] : memref<8x5xf32, #tpu.memory_space<vmem>>, vector<8x5xf32>
    tpu.vector_store %arg3[%c0_8, %c0_9], %37 {strides = array<i32>} : memref<8x5xf32, #tpu.memory_space<vmem>>, vector<8x5xf32>,
    %c0_10 = arith.constant 0 : index
    %c0_11 = arith.constant 0 : index
    %39 = vector.load %arg4[%c0_10, %c0_11] : memref<8x4xf32, #tpu.memory_space<vmem>>, vector<8x4xf32>
    tpu.vector_store %arg4[%c0_10, %c0_11], %16 {strides = array<i32>} : memref<8x4xf32, #tpu.memory_space<vmem>>, vector<8x4xf32>,
    return
  }
}

</mosaic_0001>

<bundles_post_ra>
// kernel: moe_forward.1
= control target key start
LH: loop header
LB: loop body
LE: loop exit
PB: predicated region body
PF: predicated region fallthrough
CT: control target
= control target key end

     0   :  { %10 = vsyncpa [#allocation3], 0  ;;  %s367_s0 = inlined_call_operand.hbm [shape: f32[8,10], index: 0, kind: input, shape index: {}]   ;;  %s368_s1 = inlined_call_operand.hbm [shape: f32[10,24], index: 1, kind: input, shape index: {}]   ;;  %s369_s2 = inlined_call_operand.vmem [shape: f32[1,24], index: 2, kind: input, shape index: {}]   ;;  %s370_s3 = inlined_call_operand.hbm [shape: f32[8,5], index: 3, kind: output, shape index: {0}]   ;;  %s371_s4 = inlined_call_operand.vmem [shape: f32[8,4], index: 4, kind: output, shape index: {1}]  }
   0x1   :  { %11 = vsyncpa [#allocation6], 0 }
   0x2   :  { %12 = vsyncpa [#allocation4], 0  ;;  %s309_s15 = smov [#allocation2]   ;;  %s310_s17 = smov [#allocation5]  }
   0x3   :  { %s19_s16 = sshll.u32 %s309_s15, 4  ;;  %s28_s18 = sshll.u32 %s310_s17, 4  ;;  %s20_s16 = int_to_ptr.vmem [resolvable:$true] %s19_s16  ;;  %s29_s18 = int_to_ptr.vmem [resolvable:$true] %s28_s18 }
   0x4   :  { %s251_s19 = scalar_lea.vmem %s20_s16, 128  ;;  %p256_p1 = scmp.lt.s32.totalorder %s20_s16, %s20_s16 }
   0x5   :  { %p252_p0 = scmp.ne.s32.totalorder %s20_s16, %s251_s19  ;;  %p257_p2 = scmp.lt.s32.totalorder %s251_s19, %s251_s19 }
   0x7   :  { %p258_p3 = por %p257_p2, %p256_p1 }
   0x9   :  { %p259_p4 = pnand %p258_p3, %p252_p0 }
   0xb   :  { %262 = shalt.err (!%p259_p4)
}
   0xc   :  { %22 = dma.hbm_to_vmem [thread:$0]  %s367_s0, 128, %s20_s16, [#allocation3]  }
   0xd   :  { %s271_s22 = scalar_lea.vmem %s29_s18, 256  ;;  %p276_p6 = scmp.lt.s32.totalorder %s29_s18, %s29_s18 }
   0xe   :  { %p272_p5 = scmp.ne.s32.totalorder %s29_s18, %s271_s22  ;;  %p277_p7 = scmp.lt.s32.totalorder %s271_s22, %s271_s22 }
  0x10   :  { %p278_p8 = por %p277_p7, %p276_p6 }
  0x12   :  { %p279_p9 = pnand %p278_p8, %p272_p5 }
  0x14   :  { %282 = shalt.err (!%p279_p9)
}
  0x15   :  { %s311_s23 = smov 128   ;;  %s312_s24 = smov 8  }
  0x16   :  { %34 = dma.hbm_to_vmem [thread:$0]  %s368_s1, 256, %s29_s18, [#allocation6], %s311_s23, %s311_s23, %s312_s24  }
  0x17   :  { %303 = dma.done.wait [#allocation3], 128  }
  0x18   :  { %304 = vsyncadd [#allocation3], 4294967168 }
  0x19   :  { %305 = dma.done.wait [#allocation6], 256  }
  0x1a   :  { %306 = vsyncadd [#allocation6], 4294967040  ;;  %v313_v0 = vmov 0.0   ;;  %vm314_vm0 = vmmov 0   ;;  %vm57_vm1 = vcmask 1041408   ;;  %v44_v2 = vld [vmem:[#allocation5] sm:$0xff] }
  0x1b   :  { %213 = vmatprep.subr.mxu0 %v313_v0  ;;  %217 = vmatprep.mubr.msk.f32.mxu0 %vm314_vm0, %v313_v0  ;;  %v45_v1 = vld [vmem:[#allocation5 + $0x8] sm:$0x3]  ;;  %v43_v3 = vld [vmem:[#allocation2] sm:$0xff]  ;;  %vm53_vm2 = vcmask 80896   ;;  %vm131_vm3 = vcmask 31744   ;;  %v315_v14 = vmov 3  }
  0x1c   :  { %214 = vmatpush3.msk.msra.mxu0 %vm57_vm1, %v45_v1  ;;  %v207_v4 = vld [vmem:[%s369_s2] ss:$0 sm:$0xff]  ;;  %237 = vset.pattern.permute.xlu0 %v315_v14  ;;  %v316_v15 = vmov 1   ;;  %v317_v19 = vmov 2   ;;  %v318_v20 = vmov 0   ;;  %s319_s28 = smov 123  }
  0x1d   :  { %215 = vmatprep.subr.mxu0 %v313_v0  ;;  %235 = vset.pattern.permute.xlu1 %v316_v15  ;;  %s320_s29 = smov 118   ;;  %s321_s30 = smov 113   ;;  %vm184_vm4 = vcmask 39936  }
  0x1e   :  { %216 = vmatpush3.msra.mxu0 %v44_v2  ;;  %s323_s5 = smov [#allocation7]  }
  0x1f   :  { %218 = vmatmul.mubr.msk.f32.vlgmr.msra.gmra.mxu0 %vm53_vm2, %v43_v3  ;;  %s193_s6 = sshll.u32 %s323_s5, 4  ;;  %s194_s6 = int_to_ptr.vmem [resolvable:$true] %s193_s6 }
  0x20   :  { %s283_s7 = scalar_lea.vmem %s194_s6, 128  ;;  %p288_p11 = scmp.lt.s32.totalorder %s194_s6, %s194_s6 }
  0x21   :  { %p284_p10 = scmp.ne.s32.totalorder %s194_s6, %s283_s7  ;;  %p289_p12 = scmp.lt.s32.totalorder %s283_s7, %s283_s7 }
  0x23   :  { %p290_p13 = por %p289_p12, %p288_p11 }
  0x25   :  { %p291_p0 = pnand %p290_p13, %p284_p10 }
  0xdf   :  { %v127_v5 = vpop.f32.mrf.mxu0 }
  0xe0   :  { %v128_v6 = vadd.f32 %v207_v4, %v127_v5 }
  0xe1   :  { %v219_v7 = vpop.f32.mrf.mxu0 }
  0xe2   :  { %v132_v8 = vsel %vm131_vm3, %v128_v6, -inf }
  0xe3   :  { %133 = vmax.xlane.f32.xlu0 %v132_v8 }
 0x16c   :  { %v134_v9 = vpop.xlane.xlu0 %133 }
 0x16d   :  { %v135_v10 = vsub.f32 %v128_v6, %v134_v9 }
 0x16f   :  { %v136_v11 = vmul.f32 1.442695, %v135_v10 }
 0x171   :  { %239 = vpow2.f32 %v136_v11 }
 0x17e   :  { %v240_v12 = vpop.eup %239 }
 0x17f   :  { %v138_v13 = vsel %vm131_vm3, %v240_v12, 0.0 }
 0x180   :  { %139 = vadd.xlane.f32.xlu0 %v138_v13 }
 0x209   :  { %v140_v16 = vpop.xlane.xlu0 %139 }
 0x20a   :  { %241 = vrcp.f32 %v140_v16 }
 0x217   :  { %v242_v17 = vpop.eup %241 }
 0x218   :  { %v142_v18 = vmul.f32 %v242_v17, %v240_v12 }
 0x21a   :  { %171 = vperm.xlu0 %237, %v142_v18   ;;  %186 = vst.msk [vmem:[%s371_s4] sm:$0xff] %vm131_vm3, %v142_v18  ;;  %151 = vperm.xlu1 %235, %v142_v18   ;;  %s322_s4 = smov 124  }
 0x21e   :  { %236 = vset.pattern.permute.xlu1 %v317_v19 }
 0x21f   :  { %161 = vperm.xlu1 %236, %v142_v18  }
 0x223   :  { %238 = vset.pattern.permute.xlu1 %v318_v20 }
 0x224   :  { %145 = vperm.xlu1 %238, %v142_v18  }
 0x295   :  { %v152_v21 = vpop.permute.xlu1 %151  ;;  %v172_v25 = vpop.permute.xlu0 %171 }
 0x296   :  { %v154_v22 = vmul.f32 %v152_v21, %v128_v6  ;;  %v174_v26 = vmul.f32 %v172_v25, %v128_v6 }
 0x298   :  { %156 = vrot.lane.b32.xlu1 %v154_v22, %s319_s28 }
 0x29a   :  { %v162_v23 = vpop.permute.xlu1 %161 }
 0x29b   :  { %v164_v24 = vmul.f32 %v162_v23, %v128_v6 }
 0x29d   :  { %166 = vrot.lane.b32.xlu1 %v164_v24, %s320_s29 }
 0x29f   :  { %v146_v27 = vpop.permute.xlu1 %145 }
 0x2a0   :  { %v148_v29 = vmul.f32 %v146_v27, %v128_v6 }
 0x2a1   :  { %176 = vrot.lane.b32.xlu1 %v174_v26, %s321_s30 }
 0x30a   :  { %v157_v28 = vpop.permute.xlu1 %156 }
 0x30b   :  { %v159_v31 = vadd.f32 %v157_v28, %v148_v29 }
 0x30f   :  { %v167_v30 = vpop.permute.xlu1 %166 }
 0x310   :  { %v169_v32 = vadd.f32 %v167_v30, %v159_v31 }
 0x313   :  { %v177_v33 = vpop.permute.xlu1 %176 }
 0x314   :  { %v179_v34 = vadd.f32 %v177_v33, %v169_v32 }
 0x316   :  { %181 = vrot.lane.b32.xlu1 %v179_v34, %s322_s4 }
 0x388   :  { %v182_v35 = vpop.permute.xlu1 %181 }
 0x389   :  { %185 = vst.msk [vmem:[#allocation7] sm:$0xff] %vm184_vm4, %v182_v35 }
 0x38a   :  { %294 = shalt.err (!%p291_p0)
}
 0x38b   :  { %196 = dma.vmem_to_hbm [thread:$0]  %s194_s6, 128, %s370_s3, [#allocation4]  }
 0x38c   :  { %307 = dma.done.wait [#allocation4], 128  }
 0x38d   :  { %308 = vsyncadd [#allocation4], 4294967168 }
 0x38e   :  { %204 = vsyncpa [#allocation3], 1 }
 0x38f   :  { %205 = vsyncpa [#allocation6], 1 }
 0x390   :  { %206 = vsyncpa [#allocation4], 1 }

</bundles_post_ra>
